<compile_context>
chip_gen: v7x
topology: tpu7x:2x2x1
jax: 0.10.0
libtpu: 0.0.40
codegen_flags: <defaults>
</compile_context>

<pallas_src>
import numpy as np
import jax
import jax.numpy as jnp
from jax.experimental import pallas as pl
from jax.experimental.pallas import tpu as pltpu


_K = 128  # lane-padded number of reduction columns (only cols 0..2 are used)


def _round_up(x: int, m: int) -> int:
    return ((x + m - 1) // m) * m


def _spatial_softmax_kernel(x_ref, w_ref, o_ref):
    # x_ref : (TR, N)  flattened feature tile (rows = flattened B*C)
    # w_ref : (N, K)   bf16 constants: col0 = 1, col1 = 0.5*(1-pos_y), col2 = pos_x
    # o_ref : (TR, 2)  [(-E[y]+1)/2, E[x]] per row
    x = x_ref[...].astype(jnp.float32)

    # Numerically-stable unnormalized softmax weights, fed to the MXU in bf16
    # so the reduction matmul stays off the critical path on v5e.
    m = jnp.max(x, axis=-1, keepdims=True)
    p = jnp.exp(x - m).astype(jnp.bfloat16)

    # One matmul produces denom = sum(p) plus both affine-folded numerators.
    acc = jnp.dot(p, w_ref[...], preferred_element_type=jnp.float32)  # (TR, K)

    denom = acc[:, 0:1]                              # softmax denominator
    o_ref[...] = (acc[:, 1:3] / denom).astype(o_ref.dtype)


def spatial_softmax_bz(feature: jax.Array, height: int, width: int,
                       *, target_block_bytes: int = 4 << 20) -> jax.Array:
    """feature: (B, C, H, W) -> (B, C, 2), matching the PyTorch module."""
    B, C, H, W = feature.shape
    assert H == height and W == width
    N = H * W
    R = B * C

    # Lane-pad the reduction axis once (exact: padded W rows are zero).
    N_pad = _round_up(N, 128)

    # Buffers exactly as in the PyTorch __init__ (np.meshgrid default 'xy'
    # indexing and .ravel() ordering reproduced verbatim), with the final
    # (-E[y]+1)/2 affine folded into column 1.
    # TODO(synk): validate pos_x/pos_y orientation once against the actual
    # torch module output for height != width (the reference below uses the
    # identical construction, so an axis swap would not be caught here).
    pos_x_np, pos_y_np = np.meshgrid(
        np.linspace(-1.0, 1.0, height), np.linspace(-1.0, 1.0, width)
    )
    w_np = np.zeros((N_pad, _K), dtype=np.float32)
    w_np[:N, 0] = 1.0                              # -> softmax denominator
    w_np[:N, 1] = 0.5 * (1.0 - pos_y_np.ravel())   # -> (-E[y]+1)/2 after divide
    w_np[:N, 2] = pos_x_np.ravel()                 # -> E[x] after divide
    w = jnp.asarray(w_np, dtype=jnp.bfloat16)

    x2d = feature.reshape(R, N)
    if N_pad != N:
        # Single host-side copy only when H*W is not lane-aligned.
        x2d = jnp.pad(x2d, ((0, 0), (0, N_pad - N)))

    # Row tile sized for ~target_block_bytes per input block (DMA efficiency),
    # multiple of 8 (f32 sublane).  No row padding: grid = cdiv(R, TR); the
    # ragged last block is masked on store.
    itemsize = jnp.dtype(x2d.dtype).itemsize
    TR = _round_up(max(1, target_block_bytes // (N_pad * itemsize)), 8)
    TR = min(TR, _round_up(R, 8))
    if R > 8 and pl.cdiv(R, TR) < 2:
        # Keep at least two tiles so the "parallel" grid can use both
        # TensorCores on megacore (v7x-style) parts.
        TR = _round_up(pl.cdiv(R, 2), 8)
    grid = (pl.cdiv(R, TR),)

    # Explicit VMEM budget: double-buffered input block + f32/bf16 exp
    # temporaries + double-buffered bf16 W slab + f32 acc, with headroom,
    # clamped to [32 MiB, 48 MiB].
    in_block = TR * N_pad * itemsize
    est = (2 * in_block                 # double-buffered feature tile
           + TR * N_pad * (4 + 2)       # f32 (x - m) temp + bf16 exp temp
           + 2 * N_pad * _K * 2         # W slab (pipeline-buffered)
           + TR * _K * 4)               # f32 matmul result
    vmem_limit = int(min(max(est + (4 << 20), 32 << 20), 48 << 20))

    out2d = pl.pallas_call(
        _spatial_softmax_kernel,
        out_shape=jax.ShapeDtypeStruct((R, 2), jnp.float32),
        grid=grid,
        in_specs=[
            pl.BlockSpec((TR, N_pad), lambda i: (i, 0)),   # feature tile
            pl.BlockSpec((N_pad, _K), lambda i: (0, 0)),   # constant weight slab
        ],
        out_specs=pl.BlockSpec((TR, 2), lambda i: (i, 0)),
        compiler_params=pltpu.CompilerParams(
            dimension_semantics=("parallel",),
            vmem_limit_bytes=vmem_limit),
    )(x2d, w)

    return out2d.reshape(B, C, 2)


def _reference(feature, height, width):
    # Plain-JAX reference mirroring the torch forward, for a sanity check.
    B, C, H, W = feature.shape
    pos_x_np, pos_y_np = np.meshgrid(
        np.linspace(-1.0, 1.0, height), np.linspace(-1.0, 1.0, width)
    )
    pos_x = jnp.asarray(pos_x_np.ravel(), dtype=jnp.float32)
    pos_y = jnp.asarray(pos_y_np.ravel(), dtype=jnp.float32)
    f = feature.reshape(B, C, -1).astype(jnp.float32)
    soft = jax.nn.softmax(f, axis=-1)
    ex = jnp.sum(pos_x * soft, axis=-1)
    ey = jnp.sum(pos_y * soft, axis=-1)
    return jnp.stack([(-ey + 1.0) / 2.0, ex], axis=-1)


if __name__ == "__main__":
    B, C, H, W = 2, 4, 16, 16
    key = jax.random.PRNGKey(0)
    feature = jax.random.normal(key, (B, C, H, W), dtype=jnp.float32)

    out = spatial_softmax_bz(feature, H, W)
    out = jax.block_until_ready(out)

    ref = _reference(feature, H, W)
    assert out.shape == (B, C, 2)
    # bf16 MXU feed -> expect ~1e-3 error on the expected coordinates.
    assert jnp.allclose(out, ref, atol=5e-3, rtol=0.0), float(
        jnp.max(jnp.abs(out - ref)))

    print("KERNEL_OK")
</pallas_src>

<mosaic_0001>
module attributes {stable_mosaic.version = 11 : i64} {
  func.func @_spatial_softmax_kernel(%arg0: i32, %arg1: memref<8x256xf32, #tpu.memory_space<vmem>>, %arg2: memref<256x128xbf16, #tpu.memory_space<vmem>>, %arg3: memref<8x2xf32, #tpu.memory_space<vmem>>) attributes {dimension_semantics = [#tpu.dimension_semantics<parallel>], iteration_bounds = array<i64: 1>, scalar_prefetch = 0 : i64, scratch_operands = 0 : i64, tpu.core_type = #tpu.core_type<tc>, window_params = [{transform_indices = @transform_0, window_bounds = array<i64: 8, 256>}, {pipeline_mode = #tpu.pipeline_mode<synchronous>, transform_indices = @transform_1, window_bounds = array<i64: 256, 128>}, {transform_indices = @transform_2, window_bounds = array<i64: 8, 2>}]} {
    %c0 = arith.constant 0 : index
    %c0_0 = arith.constant 0 : index
    %0 = vector.load %arg1[%c0, %c0_0] : memref<8x256xf32, #tpu.memory_space<vmem>>, vector<8x256xf32>
    %cst = arith.constant dense<0xFF800000> : vector<8xf32>
    %1 = vector.multi_reduction <maximumf>, %0, %cst [1] : vector<8x256xf32> to vector<8xf32>
    %2 = vector.shape_cast %1 : vector<8xf32> to vector<8x1xf32>
    %3 = vector.broadcast %2 : vector<8x1xf32> to vector<8x256xf32>
    %4 = arith.subf %0, %3 : vector<8x256xf32>
    %5 = math.exp %4 : vector<8x256xf32>
    %6 = arith.truncf %5 : vector<8x256xf32> to vector<8x256xbf16>
    %c0_1 = arith.constant 0 : index
    %c0_2 = arith.constant 0 : index
    %7 = vector.load %arg2[%c0_1, %c0_2] : memref<256x128xbf16, #tpu.memory_space<vmem>>, vector<256x128xbf16>
    %cst_3 = arith.constant dense<0.000000e+00> : vector<8x128xf32>
    %8 = tpu.matmul %6, %7, %cst_3 {dimension_numbers = #tpu.dot_dimension_numbers<[1], [0], [0], [1], [0, 0, 1, 1], [], []>} : vector<8x256xbf16>, vector<256x128xbf16>, vector<8x128xf32> -> vector<8x128xf32>
    %9 = vector.extract_strided_slice %8 {offsets = [0, 0], sizes = [8, 1], strides = [1, 1]} : vector<8x128xf32> to vector<8x1xf32>
    %10 = vector.extract_strided_slice %8 {offsets = [0, 1], sizes = [8, 2], strides = [1, 1]} : vector<8x128xf32> to vector<8x2xf32>
    %11 = vector.broadcast %9 : vector<8x1xf32> to vector<8x2xf32>
    %12 = arith.divf %10, %11 : vector<8x2xf32>
    %c0_4 = arith.constant 0 : index
    %c0_5 = arith.constant 0 : index
    %13 = vector.load %arg3[%c0_4, %c0_5] : memref<8x2xf32, #tpu.memory_space<vmem>>, vector<8x2xf32>
    tpu.vector_store %arg3[%c0_4, %c0_5], %12 {strides = array<i32>} : memref<8x2xf32, #tpu.memory_space<vmem>>, vector<8x2xf32>,
    return
  }
  func.func @transform_0(%arg0: i32) -> (i32, i32) {
    %c0_i32 = arith.constant 0 : i32
    %c0_i32_0 = arith.constant 0 : i32
    return %arg0, %c0_i32 : i32, i32
  }
  func.func @transform_1(%arg0: i32) -> (i32, i32) {
    %c0_i32 = arith.constant 0 : i32
    %c0_i32_0 = arith.constant 0 : i32
    %c0_i32_1 = arith.constant 0 : i32
    return %c0_i32, %c0_i32_0 : i32, i32
  }
  func.func @transform_2(%arg0: i32) -> (i32, i32) {
    %c0_i32 = arith.constant 0 : i32
    %c0_i32_0 = arith.constant 0 : i32
    return %arg0, %c0_i32 : i32, i32
  }
}

</mosaic_0001>

<bundles_post_ra>
// kernel: tpu_custom_call.1
= control target key start
LH: loop header
LB: loop body
LE: loop exit
PB: predicated region body
PF: predicated region fallthrough
CT: control target
= control target key end

     0   :  { %7 = vsyncpa [#allocation3], 0  ;;  %s408_s0 = inlined_call_operand.hbm [shape: f32[8,256], index: 0, kind: input, shape index: {}]   ;;  %s409_s1 = inlined_call_operand.hbm [shape: bf16[256,128], index: 1, kind: input, shape index: {}]   ;;  %s410_s2 = inlined_call_operand.vmem [shape: f32[8,2], index: 2, kind: output, shape index: {}]  }
   0x1   :  { %8 = vsyncpa [#allocation5], 0  ;;  %s353_s9 = smov [#allocation2]   ;;  %s354_s11 = smov [#allocation4]  }
   0x2   :  { %s15_s10 = sshll.u32 %s353_s9, 4  ;;  %s24_s12 = sshll.u32 %s354_s11, 4  ;;  %s16_s10 = int_to_ptr.vmem [resolvable:$true] %s15_s10  ;;  %s374_s12 = int_to_ptr.vmem [resolvable:$true] %s24_s12 }
   0x3   :  { %s305_s15 = scalar_lea.hbm %s408_s0, 256 }
   0x4   :  { %p306_p0 = scmp.ne.s32.totalorder %s408_s0, %s305_s15  ;;  %p309_p1 = scmp.lt.u32.totalorder %s305_s15, %s408_s0 }
   0x6   :  { %p311_p2 = pnand %p309_p1, %p306_p0 }
   0x8   :  { %314 = shalt.err (!%p311_p2)
}
   0x9   :  { %s315_s20 = scalar_lea.vmem %s16_s10, 256  ;;  %p320_p4 = scmp.lt.s32.totalorder %s16_s10, %s16_s10 }
   0xa   :  { %p316_p3 = scmp.ne.s32.totalorder %s16_s10, %s315_s20  ;;  %p321_p5 = scmp.lt.s32.totalorder %s315_s20, %s315_s20 }
   0xc   :  { %p322_p6 = por %p321_p5, %p320_p4 }
   0xe   :  { %p323_p7 = pnand %p322_p6, %p316_p3 }
  0x10   :  { %326 = shalt.err (!%p323_p7)
}
  0x11   :  { %18 = dma.hbm_to_vmem [thread:$0]  %s408_s0, 256, %s16_s10, [#allocation3]  }
  0x12   :  { %s327_s25 = scalar_lea.hbm %s409_s1, 2048 }
  0x13   :  { %p328_p8 = scmp.ne.s32.totalorder %s409_s1, %s327_s25  ;;  %p331_p9 = scmp.lt.u32.totalorder %s327_s25, %s409_s1 }
  0x15   :  { %p333_p10 = pnand %p331_p9, %p328_p8 }
  0x17   :  { %336 = shalt.err (!%p333_p10)
}
  0x18   :  { %s337_s30 = scalar_lea.vmem %s374_s12, 2048  ;;  %p342_p12 = scmp.lt.s32.totalorder %s374_s12, %s374_s12 }
  0x19   :  { %p338_p11 = scmp.ne.s32.totalorder %s374_s12, %s337_s30  ;;  %p343_p13 = scmp.lt.s32.totalorder %s337_s30, %s337_s30 }
  0x1b   :  { %p344_p0 = por %p343_p13, %p342_p12 }
  0x1d   :  { %p345_p1 = pnand %p344_p0, %p338_p11 }
  0x1f   :  { %348 = shalt.err (!%p345_p1)
}
  0x20   :  { %s355_s0 = smov 64   ;;  %s356_s3 = smov 4  }
  0x21   :  { %30 = dma.hbm_to_vmem [thread:$0]  %s409_s1, 2048, %s374_s12, [#allocation5], %s355_s0, %s355_s0, %s356_s3  }
  0x22   :  { %349 = dma.done.wait [#allocation3], 256  }
  0x23   :  { %350 = vsyncadd [#allocation3], 4294967040 }
  0x24   :  { %351 = dma.done.wait [#allocation5], 2048  }
  0x25   :  { %352 = vsyncadd [#allocation5], 4294965248  ;;  %v38_v0 = vld [vmem:[#allocation2] sm:$0xff]  ;;  %v39_v1 = vld [vmem:[#allocation2 + $0x8] sm:$0xff]  ;;  %v357_v28 = vmov 0   ;;  %s358_s1 = smov 127  }
  0x26   :  { %v40_v2 = vmax.f32 %v38_v0, %v39_v1  ;;  %v283_v3 = vld [vmem:[#allocation4 + $0x40] sm:$0xff]   ;;  %v285_v5 = vld [vmem:[#allocation4 + $0x48] sm:$0xff]   ;;  %v287_v7 = vld [vmem:[#allocation4 + $0x50] sm:$0xff]   ;;  %282 = vset.pattern.permute.xlu0 %v357_v28  ;;  %vm230_vm0 = vcmask 15360  }
  0x27   :  { %v284_v4 = vld [vmem:[#allocation4] sm:$0xff]   ;;  %254 = vmatprep.subr.bf16.mxu0 %v283_v3  ;;  %v286_v6 = vld [vmem:[#allocation4 + $0x8] sm:$0xff]   ;;  %v288_v8 = vld [vmem:[#allocation4 + $0x10] sm:$0xff]  }
  0x28   :  { %41 = vmax.xlane.f32.xlu0 %v40_v2  ;;  %255 = vmatpush3.bf16.msra.mxu0 %v284_v4  ;;  %v289_v9 = vld [vmem:[#allocation4 + $0x58] sm:$0xff]   ;;  %v291_v11 = vld [vmem:[#allocation4 + $0x60] sm:$0xff]   ;;  %v293_v13 = vld [vmem:[#allocation4 + $0x68] sm:$0xff]  }
  0x29   :  { %256 = vmatprep.subr.bf16.mxu0 %v285_v5  ;;  %v290_v10 = vld [vmem:[#allocation4 + $0x18] sm:$0xff]   ;;  %v292_v12 = vld [vmem:[#allocation4 + $0x20] sm:$0xff]   ;;  %v294_v14 = vld [vmem:[#allocation4 + $0x28] sm:$0xff]  }
  0x2a   :  { %v295_v15 = vld [vmem:[#allocation4 + $0x70] sm:$0xff]   ;;  %v297_v17 = vld [vmem:[#allocation4 + $0x78] sm:$0xff]  }
  0x2b   :  { %v296_v16 = vld [vmem:[#allocation4 + $0x30] sm:$0xff]   ;;  %v298_v18 = vld [vmem:[#allocation4 + $0x38] sm:$0xff]  }
  0x2c   :  { %257 = vmatpush3.bf16.msra.mxu0 %v286_v6 }
  0x2d   :  { %258 = vmatprep.subr.bf16.mxu0 %v287_v7 }
  0x30   :  { %259 = vmatpush3.bf16.msra.mxu0 %v288_v8 }
  0x31   :  { %260 = vmatprep.subr.bf16.mxu0 %v289_v9 }
  0x34   :  { %261 = vmatpush3.bf16.msra.mxu0 %v290_v10 }
  0x35   :  { %262 = vmatprep.subr.bf16.mxu0 %v291_v11 }
  0x38   :  { %263 = vmatpush3.bf16.msra.mxu0 %v292_v12 }
  0x39   :  { %264 = vmatprep.subr.bf16.mxu0 %v293_v13 }
  0x3c   :  { %265 = vmatpush3.bf16.msra.mxu0 %v294_v14 }
  0x3d   :  { %266 = vmatprep.subr.bf16.mxu0 %v295_v15 }
  0x40   :  { %267 = vmatpush3.bf16.msra.mxu0 %v296_v16 }
  0x41   :  { %268 = vmatprep.subr.bf16.mxu0 %v297_v17 }
  0x44   :  { %269 = vmatpush3.bf16.msra.mxu0 %v298_v18 }
  0xb5   :  { %v42_v19 = vpop.xlane.xlu0 %41 }
  0xb6   :  { %v43_v20 = vsub.f32 %v38_v0, %v42_v19  ;;  %v44_v21 = vsub.f32 %v39_v1, %v42_v19 }
  0xb8   :  { %v45_v22 = vmul.f32 1.442695, %v43_v20  ;;  %v47_v23 = vmul.f32 1.442695, %v44_v21 }
  0xba   :  { %299 = vpow2.f32 %v45_v22 }
  0xbb   :  { %301 = vpow2.f32 %v47_v23 }
  0xc4   :  { %v300_v24 = vpop.eup %299 }
  0xc5   :  { %v302_v25 = vpop.eup %301  ;;  %v49_v26 = vpack.c.bf16 %v300_v24, %v300_v24 }
  0xc6   :  { %v50_v27 = vpack.c.bf16 %v302_v25, %v302_v25 }
  0xc8   :  { %211 = vmatprep.mubr.bf16.mxu0 %v50_v27 }
  0xc9   :  { %212 = vmatmul.mubr.bf16.vlgmr.msra.gmra.mrb[0].mxu0 %v49_v26 }
 0x19c   :  { %v270_v29 = vpop.f32.mrb[0].mxu0 }
 0x19d   :  { %v271_v30 = vpop.f32.mrb[1].mxu0 }
 0x19e   :  { %v272_v31 = vadd.f32 %v271_v30, %v270_v29  ;;  %v273_v32 = vpop.f32.mrb[2].mxu0 }
 0x19f   :  { %v274_v33 = vpop.f32.mrb[3].mxu0 }
 0x1a0   :  { %221 = vperm.xlu0 %282, %v272_v31  }
 0x21f   :  { %v222_v34 = vpop.permute.xlu0 %221 }
 0x220   :  { %303 = vrcp.f32 %v222_v34 }
 0x22a   :  { %v304_v35 = vpop.eup %303 }
 0x22b   :  { %v225_v36 = vmul.f32 %v304_v35, %v272_v31 }
 0x22d   :  { %227 = vrot.lane.b32.xlu1 %v225_v36, %s358_s1 }
 0x29f   :  { %v228_v37 = vpop.permute.xlu1 %227 }
 0x2a0   :  { %231 = vst.msk [vmem:[%s410_s2] sm:$0xff] %vm230_vm0, %v228_v37 }
 0x2a1   :  { %236 = vsyncpa [#allocation3], 1 }
 0x2a2   :  { %237 = vsyncpa [#allocation5], 1 }

</bundles_post_ra>
